<compile_context>
chip_gen: v7x
topology: tpu7x:2x2x1
jax: 0.10.0
libtpu: 0.0.40
codegen_flags: <defaults>
</compile_context>

<pallas_src>
import jax
import jax.numpy as jnp
from jax.experimental import pallas as pl
from jax.experimental.pallas import tpu as pltpu

LANE = 128  # pad hidden layer widths to a full lane tile


def _round_up(n, m):
    return ((n + m - 1) // m) * m


def _pad2(a, rows, cols):
    r, c = a.shape
    return jnp.pad(a, ((0, rows - r), (0, cols - c)))


def net_kernel(x_ref, w1_ref, b1_ref, w2_ref, b2_ref, w3_ref, b3_ref, o_ref):
    cd = w1_ref.dtype
    f32 = jnp.float32

    # fc1 + ReLU   (bf16 MXU matmul, f32 accumulate / bias / relu)
    h1 = jnp.dot(x_ref[...], w1_ref[...], preferred_element_type=f32)
    h1 = jnp.maximum(h1 + b1_ref[...], 0.0)

    # fc2 + ReLU
    h2 = jnp.dot(h1.astype(cd), w2_ref[...], preferred_element_type=f32)
    h2 = jnp.maximum(h2 + b2_ref[...], 0.0)

    # out layer (width 1): round operands to bf16 (matches the MXU recipe of
    # the reference), form exact f32 products on the VPU, reduce on the XLU.
    hb = h2.astype(cd).astype(f32)                 # bf16-rounded, held in f32
    prod = hb * w3_ref[...].astype(f32)            # (TB, LANE)
    out = jnp.sum(prod, axis=-1, keepdims=True) + b3_ref[...]   # (TB, 1)
    o_ref[...] = out.astype(o_ref.dtype)


def net_forward(x, params, *, block_b=512, compute_dtype=jnp.bfloat16):
    """x: [B, H] float32.  params: raw (transposed-vs-PyTorch) weights/biases."""
    B, H = x.shape

    # ---- lane-dense, low-precision operands (pad once in the wrapper) ----
    w1 = _pad2(params["w1"], H, LANE).astype(compute_dtype)      # [H,   128]
    b1 = _pad2(params["b1"], 1, LANE)                            # [1,   128] f32
    w2 = _pad2(params["w2"], LANE, LANE).astype(compute_dtype)   # [128, 128]
    b2 = _pad2(params["b2"], 1, LANE)
    w3 = _pad2(params["w3"].T, 1, LANE).astype(compute_dtype)    # [1,   128] (row)
    b3 = params["b3"]                                            # [1, 1]   f32

    # ---- batch tiling: TB rows per grid step, weights resident across steps ----
    TB = min(block_b, _round_up(B, 16))
    Bp = _round_up(B, TB)
    xb = x.astype(compute_dtype)
    if Bp != B:
        xb = jnp.pad(xb, ((0, Bp - B), (0, 0)))

    const = lambda i: (0, 0)
    out_padded = pl.pallas_call(
        net_kernel,
        out_shape=jax.ShapeDtypeStruct((Bp, 1), jnp.float32),
        grid=(Bp // TB,),
        in_specs=[
            pl.BlockSpec((TB, H), lambda i: (i, 0)),   # x   (streamed per tile)
            pl.BlockSpec((H, LANE), const),            # w1  (resident)
            pl.BlockSpec((1, LANE), const),            # b1
            pl.BlockSpec((LANE, LANE), const),         # w2
            pl.BlockSpec((1, LANE), const),            # b2
            pl.BlockSpec((1, LANE), const),            # w3 (row vector)
            pl.BlockSpec((1, 1), const),               # b3 (scalar)
        ],
        out_specs=pl.BlockSpec((TB, 1), lambda i: (i, 0)),
        compiler_params=pltpu.CompilerParams(
            dimension_semantics=("parallel",)),
    )(xb, w1, b1, w2, b2, w3, b3)

    return out_padded[:B]


def init_params(key, hidden_state):
    """Mirror the PyTorch module: weights ~ Normal(0, 0.1); biases ~ default
       nn.Linear init Uniform(-1/sqrt(fan_in), 1/sqrt(fan_in)).
       Weights stored as [in_features, out_features] (transposed vs PyTorch)."""
    dims = [(hidden_state, 50), (50, 30), (30, 1)]
    keys = jax.random.split(key, 2 * len(dims))
    params = {}
    for i, (fan_in, fan_out) in enumerate(dims):
        wk, bk = keys[2 * i], keys[2 * i + 1]
        bound = 1.0 / jnp.sqrt(fan_in)
        params[f"w{i+1}"] = 0.1 * jax.random.normal(wk, (fan_in, fan_out),
                                                    dtype=jnp.float32)
        params[f"b{i+1}"] = jax.random.uniform(bk, (1, fan_out), dtype=jnp.float32,
                                               minval=-bound, maxval=bound)
    return params


def net_forward_ref(x, params, compute_dtype=jnp.bfloat16):
    """Pure-JAX reference using the same bf16-in / f32-accumulate recipe."""
    cd = compute_dtype
    h1 = jnp.dot(x.astype(cd), params["w1"].astype(cd),
                 preferred_element_type=jnp.float32) + params["b1"]
    h1 = jnp.maximum(h1, 0.0)
    h2 = jnp.dot(h1.astype(cd), params["w2"].astype(cd),
                 preferred_element_type=jnp.float32) + params["b2"]
    h2 = jnp.maximum(h2, 0.0)
    return jnp.dot(h2.astype(cd), params["w3"].astype(cd),
                   preferred_element_type=jnp.float32) + params["b3"]


if __name__ == "__main__":
    hidden_state = 32
    batch = 4

    key = jax.random.PRNGKey(0)
    kx, kp = jax.random.split(key)
    x = jax.random.normal(kx, (batch, hidden_state), dtype=jnp.float32)
    params = init_params(kp, hidden_state)

    out = net_forward(x, params)
    out = jax.block_until_ready(out)

    ref = net_forward_ref(x, params)
    assert out.shape == (batch, 1)
    # Tolerance covers bf16-path summation-order differences between the MXU
    # (reference) and the VPU+XLU reduce used for the width-1 output layer.
    assert jnp.allclose(out, ref, atol=1e-3, rtol=1e-3), (
        f"max abs err {jnp.max(jnp.abs(out - ref))}")

    print("KERNEL_OK")
</pallas_src>

<mosaic_0001>
module attributes {stable_mosaic.version = 11 : i64} {
  func.func @net_kernel(%arg0: i32, %arg1: memref<16x32xbf16, #tpu.memory_space<vmem>>, %arg2: memref<32x128xbf16, #tpu.memory_space<vmem>>, %arg3: memref<1x128xf32, #tpu.memory_space<vmem>>, %arg4: memref<128x128xbf16, #tpu.memory_space<vmem>>, %arg5: memref<1x128xf32, #tpu.memory_space<vmem>>, %arg6: memref<1x128xbf16, #tpu.memory_space<vmem>>, %arg7: memref<1x1xf32, #tpu.memory_space<vmem>>, %arg8: memref<16x1xf32, #tpu.memory_space<vmem>>) attributes {dimension_semantics = [#tpu.dimension_semantics<parallel>], iteration_bounds = array<i64: 1>, scalar_prefetch = 0 : i64, scratch_operands = 0 : i64, tpu.core_type = #tpu.core_type<tc>, window_params = [{transform_indices = @transform_0, window_bounds = array<i64: 16, 32>}, {pipeline_mode = #tpu.pipeline_mode<synchronous>, transform_indices = @transform_1, window_bounds = array<i64: 32, 128>}, {pipeline_mode = #tpu.pipeline_mode<synchronous>, transform_indices = @transform_2, window_bounds = array<i64: 1, 128>}, {pipeline_mode = #tpu.pipeline_mode<synchronous>, transform_indices = @transform_3, window_bounds = array<i64: 128, 128>}, {pipeline_mode = #tpu.pipeline_mode<synchronous>, transform_indices = @transform_4, window_bounds = array<i64: 1, 128>}, {pipeline_mode = #tpu.pipeline_mode<synchronous>, transform_indices = @transform_5, window_bounds = array<i64: 1, 128>}, {pipeline_mode = #tpu.pipeline_mode<synchronous>, transform_indices = @transform_6, window_bounds = array<i64: 1, 1>}, {transform_indices = @transform_7, window_bounds = array<i64: 16, 1>}]} {
    %c0 = arith.constant 0 : index
    %c0_0 = arith.constant 0 : index
    %0 = vector.load %arg1[%c0, %c0_0] : memref<16x32xbf16, #tpu.memory_space<vmem>>, vector<16x32xbf16>
    %c0_1 = arith.constant 0 : index
    %c0_2 = arith.constant 0 : index
    %1 = vector.load %arg2[%c0_1, %c0_2] : memref<32x128xbf16, #tpu.memory_space<vmem>>, vector<32x128xbf16>
    %cst = arith.constant dense<0.000000e+00> : vector<16x128xf32>
    %2 = tpu.matmul %0, %1, %cst {dimension_numbers = #tpu.dot_dimension_numbers<[1], [0], [0], [1], [0, 0, 1, 1], [], []>} : vector<16x32xbf16>, vector<32x128xbf16>, vector<16x128xf32> -> vector<16x128xf32>
    %c0_3 = arith.constant 0 : index
    %c0_4 = arith.constant 0 : index
    %3 = vector.load %arg3[%c0_3, %c0_4] : memref<1x128xf32, #tpu.memory_space<vmem>>, vector<1x128xf32>
    %4 = vector.broadcast %3 : vector<1x128xf32> to vector<16x128xf32>
    %5 = arith.addf %2, %4 : vector<16x128xf32>
    %cst_5 = arith.constant 0.000000e+00 : f32
    %6 = vector.broadcast %cst_5 : f32 to vector<16x128xf32>
    %7 = arith.maximumf %5, %6 : vector<16x128xf32>
    %8 = arith.truncf %7 : vector<16x128xf32> to vector<16x128xbf16>
    %c0_6 = arith.constant 0 : index
    %c0_7 = arith.constant 0 : index
    %9 = vector.load %arg4[%c0_6, %c0_7] : memref<128x128xbf16, #tpu.memory_space<vmem>>, vector<128x128xbf16>
    %cst_8 = arith.constant dense<0.000000e+00> : vector<16x128xf32>
    %10 = tpu.matmul %8, %9, %cst_8 {dimension_numbers = #tpu.dot_dimension_numbers<[1], [0], [0], [1], [0, 0, 1, 1], [], []>} : vector<16x128xbf16>, vector<128x128xbf16>, vector<16x128xf32> -> vector<16x128xf32>
    %c0_9 = arith.constant 0 : index
    %c0_10 = arith.constant 0 : index
    %11 = vector.load %arg5[%c0_9, %c0_10] : memref<1x128xf32, #tpu.memory_space<vmem>>, vector<1x128xf32>
    %12 = vector.broadcast %11 : vector<1x128xf32> to vector<16x128xf32>
    %13 = arith.addf %10, %12 : vector<16x128xf32>
    %cst_11 = arith.constant 0.000000e+00 : f32
    %14 = vector.broadcast %cst_11 : f32 to vector<16x128xf32>
    %15 = arith.maximumf %13, %14 : vector<16x128xf32>
    %16 = arith.truncf %15 : vector<16x128xf32> to vector<16x128xbf16>
    %17 = arith.extf %16 : vector<16x128xbf16> to vector<16x128xf32>
    %c0_12 = arith.constant 0 : index
    %c0_13 = arith.constant 0 : index
    %18 = vector.load %arg6[%c0_12, %c0_13] : memref<1x128xbf16, #tpu.memory_space<vmem>>, vector<1x128xbf16>
    %19 = arith.extf %18 : vector<1x128xbf16> to vector<1x128xf32>
    %20 = vector.broadcast %19 : vector<1x128xf32> to vector<16x128xf32>
    %21 = arith.mulf %17, %20 : vector<16x128xf32>
    %cst_14 = arith.constant dense<0.000000e+00> : vector<16xf32>
    %22 = vector.multi_reduction <add>, %21, %cst_14 [1] : vector<16x128xf32> to vector<16xf32>
    %23 = vector.shape_cast %22 : vector<16xf32> to vector<16x1xf32>
    %c0_15 = arith.constant 0 : index
    %c0_16 = arith.constant 0 : index
    %24 = vector.load %arg7[%c0_15, %c0_16] : memref<1x1xf32, #tpu.memory_space<vmem>>, vector<1x1xf32>
    %25 = vector.broadcast %24 : vector<1x1xf32> to vector<16x1xf32>
    %26 = arith.addf %23, %25 : vector<16x1xf32>
    %c0_17 = arith.constant 0 : index
    %c0_18 = arith.constant 0 : index
    %27 = vector.load %arg8[%c0_17, %c0_18] : memref<16x1xf32, #tpu.memory_space<vmem>>, vector<16x1xf32>
    tpu.vector_store %arg8[%c0_17, %c0_18], %26 {strides = array<i32>} : memref<16x1xf32, #tpu.memory_space<vmem>>, vector<16x1xf32>,
    return
  }
  func.func @transform_0(%arg0: i32) -> (i32, i32) {
    %c0_i32 = arith.constant 0 : i32
    %c0_i32_0 = arith.constant 0 : i32
    return %arg0, %c0_i32 : i32, i32
  }
  func.func @transform_1(%arg0: i32) -> (i32, i32) {
    %c0_i32 = arith.constant 0 : i32
    %c0_i32_0 = arith.constant 0 : i32
    %c0_i32_1 = arith.constant 0 : i32
    return %c0_i32, %c0_i32_0 : i32, i32
  }
  func.func @transform_2(%arg0: i32) -> (i32, i32) {
    %c0_i32 = arith.constant 0 : i32
    %c0_i32_0 = arith.constant 0 : i32
    %c0_i32_1 = arith.constant 0 : i32
    return %c0_i32, %c0_i32_0 : i32, i32
  }
  func.func @transform_3(%arg0: i32) -> (i32, i32) {
    %c0_i32 = arith.constant 0 : i32
    %c0_i32_0 = arith.constant 0 : i32
    %c0_i32_1 = arith.constant 0 : i32
    return %c0_i32, %c0_i32_0 : i32, i32
  }
  func.func @transform_4(%arg0: i32) -> (i32, i32) {
    %c0_i32 = arith.constant 0 : i32
    %c0_i32_0 = arith.constant 0 : i32
    %c0_i32_1 = arith.constant 0 : i32
    return %c0_i32, %c0_i32_0 : i32, i32
  }
  func.func @transform_5(%arg0: i32) -> (i32, i32) {
    %c0_i32 = arith.constant 0 : i32
    %c0_i32_0 = arith.constant 0 : i32
    %c0_i32_1 = arith.constant 0 : i32
    return %c0_i32, %c0_i32_0 : i32, i32
  }
  func.func @transform_6(%arg0: i32) -> (i32, i32) {
    %c0_i32 = arith.constant 0 : i32
    %c0_i32_0 = arith.constant 0 : i32
    %c0_i32_1 = arith.constant 0 : i32
    return %c0_i32, %c0_i32_0 : i32, i32
  }
  func.func @transform_7(%arg0: i32) -> (i32, i32) {
    %c0_i32 = arith.constant 0 : i32
    %c0_i32_0 = arith.constant 0 : i32
    return %arg0, %c0_i32 : i32, i32
  }
}

</mosaic_0001>

<bundles_post_ra>
// kernel: tpu_custom_call.1
= control target key start
LH: loop header
LB: loop body
LE: loop exit
PB: predicated region body
PF: predicated region fallthrough
CT: control target
= control target key end

     0   :  { %s555_s0 = inlined_call_operand.hbm [shape: bf16[16,32], index: 0, kind: input, shape index: {}]   ;;  %s556_s1 = inlined_call_operand.hbm [shape: bf16[32,128], index: 1, kind: input, shape index: {}]   ;;  %s557_s2 = inlined_call_operand.vmem [shape: f32[1,128], index: 2, kind: input, shape index: {}]   ;;  %s558_s3 = inlined_call_operand.hbm [shape: bf16[128,128], index: 3, kind: input, shape index: {}]   ;;  %s559_s4 = inlined_call_operand.vmem [shape: f32[1,128], index: 4, kind: input, shape index: {}]   ;;  %s560_s5 = inlined_call_operand.vmem [shape: bf16[1,128], index: 5, kind: input, shape index: {}]   ;;  %s561_s6 = inlined_call_operand.<no memory space> [shape: f32[1,1], index: 6, kind: input, shape index: {}]   ;;  %s562_s7 = inlined_call_operand.vmem [shape: f32[16,1], index: 7, kind: output, shape index: {}]  }
   0x1   :  { %v12_v0 = vstv %s561_s6 }
   0x2   :  { %13 = vst [vmem:[#allocation2] sm:$0x1] %v12_v0 }
   0x3   :  { %14 = vsyncpa [#allocation4], 0 }
   0x4   :  { %15 = vsyncpa [#allocation6], 0  ;;  %s438_s26 = smov [#allocation5]   ;;  %s439_s28 = smov [#allocation3]  }
   0x5   :  { %s33_s27 = sshll.u32 %s438_s26, 4  ;;  %s21_s29 = sshll.u32 %s439_s28, 4  ;;  %s34_s27 = int_to_ptr.vmem [resolvable:$true] %s33_s27  ;;  %s488_s29 = int_to_ptr.vmem [resolvable:$true] %s21_s29 }
   0x6   :  { %s368_s9 = scalar_lea.hbm %s556_s1, 256 }
   0x7   :  { %p369_p0 = scmp.ne.s32.totalorder %s556_s1, %s368_s9  ;;  %p372_p1 = scmp.lt.u32.totalorder %s368_s9, %s556_s1 }
   0x9   :  { %p374_p2 = pnand %p372_p1, %p369_p0 }
   0xb   :  { %377 = shalt.err (!%p374_p2)
}
   0xc   :  { %s378_s13 = scalar_lea.vmem %s34_s27, 256  ;;  %p383_p4 = scmp.lt.s32.totalorder %s34_s27, %s34_s27 }
   0xd   :  { %p379_p3 = scmp.ne.s32.totalorder %s34_s27, %s378_s13  ;;  %p384_p5 = scmp.lt.s32.totalorder %s378_s13, %s378_s13 }
   0xf   :  { %p385_p6 = por %p384_p5, %p383_p4 }
  0x11   :  { %p386_p7 = pnand %p385_p6, %p379_p3 }
  0x13   :  { %389 = shalt.err (!%p386_p7)
}
  0x14   :  { %s440_s14 = smov 64   ;;  %s441_s15 = smov 4  }
  0x15   :  { %39 = dma.hbm_to_vmem [thread:$0]  %s556_s1, 256, %s34_s27, [#allocation6], %s440_s14, %s440_s14, %s441_s15  }
  0x16   :  { %s390_s20 = scalar_lea.hbm %s555_s0, 128 }
  0x17   :  { %p391_p8 = scmp.ne.s32.totalorder %s555_s0, %s390_s20  ;;  %p394_p9 = scmp.lt.u32.totalorder %s390_s20, %s555_s0 }
  0x19   :  { %p396_p10 = pnand %p394_p9, %p391_p8 }
  0x1b   :  { %399 = shalt.err (!%p396_p10)
}
  0x1c   :  { %s400_s25 = scalar_lea.vmem %s488_s29, 128  ;;  %p405_p12 = scmp.lt.s32.totalorder %s488_s29, %s488_s29 }
  0x1d   :  { %p401_p11 = scmp.ne.s32.totalorder %s488_s29, %s400_s25  ;;  %p406_p13 = scmp.lt.s32.totalorder %s400_s25, %s400_s25 }
  0x1f   :  { %p407_p0 = por %p406_p13, %p405_p12 }
  0x21   :  { %p408_p1 = pnand %p407_p0, %p401_p11 }
  0x23   :  { %411 = shalt.err (!%p408_p1)
}
  0x24   :  { %27 = dma.hbm_to_vmem [thread:$0]  %s555_s0, 128, %s488_s29, [#allocation4], %s440_s14, %s440_s14, %s441_s15  }
  0x25   :  { %s442_s27 = smov [#allocation7]   ;;  %s412_s9 = scalar_lea.hbm %s558_s3, 1024 }
  0x26   :  { %s47_s28 = sshll.u32 %s442_s27, 4  ;;  %p413_p2 = scmp.ne.s32.totalorder %s558_s3, %s412_s9  ;;  %s48_s28 = int_to_ptr.vmem [resolvable:$true] %s47_s28 }
  0x27   :  { %p416_p3 = scmp.lt.u32.totalorder %s412_s9, %s558_s3 }
  0x29   :  { %p418_p4 = pnand %p416_p3, %p413_p2 }
  0x2b   :  { %421 = shalt.err (!%p418_p4)
}
  0x2c   :  { %s422_s13 = scalar_lea.vmem %s48_s28, 1024  ;;  %p427_p6 = scmp.lt.s32.totalorder %s48_s28, %s48_s28 }
  0x2d   :  { %p423_p5 = scmp.ne.s32.totalorder %s48_s28, %s422_s13  ;;  %p428_p7 = scmp.lt.s32.totalorder %s422_s13, %s422_s13 }
  0x2f   :  { %p429_p8 = por %p428_p7, %p427_p6 }
  0x31   :  { %p430_p9 = pnand %p429_p8, %p423_p5 }
  0x33   :  { %433 = shalt.err (!%p430_p9)
}
  0x34   :  { %53 = dma.hbm_to_vmem [thread:$0]  %s558_s3, 1024, %s48_s28, [#allocation6], %s440_s14, %s440_s14, %s441_s15  }
  0x35   :  { %434 = dma.done.wait [#allocation4], 128  }
  0x36   :  { %435 = vsyncadd [#allocation4], 4294967168 }
  0x37   :  { %436 = dma.done.wait [#allocation6], 1280  }
  0x38   :  { %437 = vsyncadd [#allocation6], 4294966016  ;;  %v443_v1 = vmov 0.0   ;;  %vm444_vm0 = vmmov 0   ;;  %v357_v2 = vld [vmem:[#allocation5] sm:$0xff]   ;;  %v358_v3 = vld [vmem:[#allocation5 + $0x8] sm:$0xff]   ;;  %v267_v23 = vlaneseq }
  0x39   :  { %322 = vmatprep.subr.bf16.mxu0 %v443_v1  ;;  %326 = vmatprep.mubr.msk.bf16.mxu0 %vm444_vm0, %v443_v1  ;;  %v360_v4 = vld [vmem:[#allocation7] sm:$0xff]   ;;  %v359_v5 = vld [vmem:[#allocation3] sm:$0xff]   ;;  %vm100_vm1 = vcmask 261120   ;;  %v362_v7 = vld [vmem:[#allocation7 + $0x10] sm:$0xff]   ;;  %vm286_vm2 = vcmask 7168  }
  0x3a   :  { %330 = vmatprep.subr.bf16.mxu1 %v443_v1  ;;  %346 = vmatprep.mubr.msk.bf16.mxu1 %vm444_vm0, %v443_v1  ;;  %v361_v6 = vld [vmem:[#allocation7 + $0x8] sm:$0xff]   ;;  %v363_v8 = vld [vmem:[#allocation7 + $0x18] sm:$0xff]   ;;  %v364_v9 = vld [vmem:[#allocation7 + $0x20] sm:$0xff]   ;;  %v268_v25 = vshrl.u32 %v267_v23, 7 }
  0x3b   :  { %323 = vmatpush3.bf16.msra.mxu0 %v357_v2  ;;  %331 = vmatpush3.bf16.msra.mxu1 %v360_v4  ;;  %v365_v10 = vld [vmem:[#allocation7 + $0x28] sm:$0xff]   ;;  %v366_v11 = vld [vmem:[#allocation7 + $0x30] sm:$0xff]   ;;  %v367_v12 = vld [vmem:[#allocation7 + $0x38] sm:$0xff]  }
  0x3c   :  { %324 = vmatprep.subr.bf16.mxu0 %v443_v1  ;;  %332 = vmatprep.subr.bf16.mxu1 %v443_v1  ;;  %v295_v13 = vld [vmem:[%s557_s2] ss:$0 sm:$0xff]  ;;  %v269_v34 = vsub.s32 0, %v268_v25 }
  0x3d   :  { %v300_v24 = vld [vmem:[%s559_s4] ss:$0 sm:$0xff] }
  0x3e   :  { %v265_v27 = vld [vmem:[%s560_s5] sm:$0x1] }
  0x3f   :  { %325 = vmatpush3.bf16.msra.mxu0 %v358_v3  ;;  %333 = vmatpush3.bf16.msra.mxu1 %v361_v6  ;;  %v266_v33 = vunpack.c.l.bf16 %v265_v27  ;;  %v309_v43 = vld [vmem:[#allocation2] ss:$0 sm:$0xff] }
  0x40   :  { %334 = vmatprep.subr.bf16.mxu1 %v443_v1 }
  0x41   :  { %v270_v38 = vrot.slane %v266_v33, %v269_v34 }
  0x42   :  { %327 = vmatmul.mubr.msk.bf16.vlgmr.msra.gmra.mrb[0].mxu0 %vm100_vm1, %v359_v5 }
  0x43   :  { %335 = vmatpush3.bf16.msra.mxu1 %v362_v7 }
  0x44   :  { %336 = vmatprep.subr.bf16.mxu1 %v443_v1 }
  0x47   :  { %337 = vmatpush3.bf16.msra.mxu1 %v363_v8 }
  0x48   :  { %338 = vmatprep.subr.bf16.mxu1 %v443_v1 }
  0x4b   :  { %339 = vmatpush3.bf16.msra.mxu1 %v364_v9 }
  0x4c   :  { %340 = vmatprep.subr.bf16.mxu1 %v443_v1 }
  0x4f   :  { %341 = vmatpush3.bf16.msra.mxu1 %v365_v10 }
  0x50   :  { %342 = vmatprep.subr.bf16.mxu1 %v443_v1 }
  0x53   :  { %343 = vmatpush3.bf16.msra.mxu1 %v366_v11 }
  0x54   :  { %344 = vmatprep.subr.bf16.mxu1 %v443_v1 }
  0x57   :  { %345 = vmatpush3.bf16.msra.mxu1 %v367_v12 }
 0x115   :  { %v138_v14 = vpop.f32.mrb[0].mxu0 }
 0x116   :  { %v139_v15 = vadd.f32 %v295_v13, %v138_v14  ;;  %v328_v16 = vpop.f32.mrb[1].mxu0 }
 0x117   :  { %v141_v17 = vpop.f32.mrb[2].mxu0 }
 0x118   :  { %v142_v18 = vadd.f32 %v295_v13, %v141_v17  ;;  %v329_v19 = vpop.f32.mrb[3].mxu0  ;;  %v145_v20 = vmax.f32 %v139_v15, 0.0 }
 0x11a   :  { %v146_v21 = vmax.f32 %v142_v18, 0.0 }
 0x11c   :  { %v147_v22 = vpack.c.bf16 %v146_v21, %v145_v20 }
 0x11e   :  { %347 = vmatmul.mubr.bf16.vlgmr.msra.gmra.mrb[0].mxu1 %v147_v22 }
 0x1f1   :  { %v253_v26 = vpop.f32.mrb[0].mxu1 }
 0x1f2   :  { %v254_v28 = vadd.f32 %v300_v24, %v253_v26  ;;  %v348_v29 = vpop.f32.mrb[1].mxu1 }
 0x1f3   :  { %v256_v30 = vpop.f32.mrb[2].mxu1 }
 0x1f4   :  { %v257_v31 = vadd.f32 %v300_v24, %v256_v30  ;;  %v349_v32 = vpop.f32.mrb[3].mxu1  ;;  %v260_v35 = vmax.f32 %v254_v28, 0.0 }
 0x1f6   :  { %v261_v36 = vmax.f32 %v257_v31, 0.0 }
 0x1f8   :  { %v262_v37 = vpack.c.bf16 %v261_v36, %v260_v35 }
 0x1fa   :  { %v263_v39 = vunpack.c.l.bf16 %v262_v37  ;;  %v264_v41 = vunpack.c.h.bf16 %v262_v37 }
 0x1fc   :  { %v271_v40 = vmul.f32 %v270_v38, %v263_v39  ;;  %v272_v42 = vmul.f32 %v270_v38, %v264_v41 }
 0x1fe   :  { %273 = vadd.xlane.f32.xlu0 %v271_v40 }
 0x202   :  { %275 = vadd.xlane.f32.xlu0 %v272_v42 }
 0x28b   :  { %v274_v44 = vpop.xlane.xlu0 %273 }
 0x28c   :  { %v284_v45 = vadd.f32 %v309_v43, %v274_v44 }
 0x28e   :  { %287 = vst.msk [vmem:[%s562_s7] sm:$0xff] %vm286_vm2, %v284_v45 }
 0x28f   :  { %v276_v46 = vpop.xlane.xlu0 %275 }
 0x290   :  { %v285_v47 = vadd.f32 %v309_v43, %v276_v46 }
 0x292   :  { %288 = vst.msk [vmem:[%s562_s7 + $0x8] sm:$0xff] %vm286_vm2, %v285_v47 }
 0x293   :  { %293 = vsyncpa [#allocation4], 1 }
 0x294   :  { %294 = vsyncpa [#allocation6], 1 }

</bundles_post_ra>
